<compile_context>
chip_gen: v5e
topology: v5e:2x2
jax: 0.10.0
libtpu: 0.0.40
codegen_flags: <defaults>
</compile_context>

<pallas_src>
from typing import NamedTuple

import jax
import jax.numpy as jnp
import numpy as np
from jax.experimental import pallas as pl
from jax.experimental.pallas import tpu as pltpu

IMAGENET_MEAN = (0.485, 0.456, 0.406)
IMAGENET_STD = (0.229, 0.224, 0.225)


def _folded_head_kernel(x_ref, w_ref, b_ref, o_ref):
    # x_ref: (Np, tk)  weight-dtype activation tile
    # w_ref: (tk, tn)  weight-dtype folded-weight tile (streamed, double-buffered)
    # b_ref: (1,  tn)  f32 folded bias tile
    # o_ref: (Np, tn)  f32 logits block (VMEM-resident across the reduction axis)
    r = pl.program_id(1)  # reduction step (last grid axis)

    @pl.when(r == 0)
    def _():
        o_ref[...] = jnp.broadcast_to(b_ref[...], o_ref.shape)

    o_ref[...] += jnp.dot(
        x_ref[...], w_ref[...], preferred_element_type=jnp.float32)


class FoldedHead(NamedTuple):
    w: jax.Array       # (chw_pad, k_pad) weight_dtype  (norm folded in, padded)
    b: jax.Array       # (1, k_pad) f32                 (norm folded in, padded)
    chw: int
    k: int
    chw_pad: int
    k_pad: int
    tk: int
    tn: int


def prepare_classifier_head(w, b, *, c, hw, weight_dtype=jnp.bfloat16,
                            tk_cap=4096, tn=None):
    """One-time prep: fold the frozen normalization into the frozen head,
    pad to TPU-friendly shapes and cast to the streaming weight dtype."""
    chw = c * hw
    k = b.shape[0]
    assert c == len(IMAGENET_MEAN), "Normalization is defined for 3 channels"
    assert w.shape == (chw, k)

    mean = jnp.asarray(IMAGENET_MEAN, jnp.float32).reshape(c, 1, 1)
    std = jnp.asarray(IMAGENET_STD, jnp.float32).reshape(c, 1, 1)

    w3 = w.reshape(c, hw, k).astype(jnp.float32)     # rows in (C, H, W) order
    w_fold = (w3 / std).reshape(chw, k)
    b_fold = b.astype(jnp.float32) - jnp.sum((mean / std) * w3, axis=(0, 1))

    # Lane-dense class axis; output tile covers all classes by default.
    k_pad = -(-k // 128) * 128
    if tn is None:
        tn = k_pad
    assert k_pad % tn == 0 and tn % 128 == 0

    # Reduction tile: multiple of 128, capped; single step at small chw.
    chw128 = -(-chw // 128) * 128
    tk = min(chw128, max(128, (tk_cap // 128) * 128))
    chw_pad = -(-chw128 // tk) * tk

    wp = jnp.pad(w_fold, ((0, chw_pad - chw), (0, k_pad - k))).astype(weight_dtype)
    bp = jnp.pad(b_fold, (0, k_pad - k)).reshape(1, k_pad)
    return FoldedHead(w=wp, b=bp, chw=chw, k=k, chw_pad=chw_pad,
                      k_pad=k_pad, tk=tk, tn=tn)


def classifier_forward(x_nchw, head: FoldedHead):
    """x_nchw: (N, 3, H, W) f32 in [0, 1]. Returns logits (N, K)."""
    n, c, h, wd = x_nchw.shape
    chw = c * h * wd
    assert chw == head.chw

    w_itemsize = jnp.dtype(head.w.dtype).itemsize
    # bf16 (and narrower) sublane packing wants 16 rows; f32 wants 8.
    min_rows = 8 if w_itemsize >= 4 else 16
    n_pad = -(-n // min_rows) * min_rows

    x2 = x_nchw.reshape(n, chw).astype(jnp.float32)
    x2 = jnp.pad(x2, ((0, n_pad - n), (0, head.chw_pad - chw)))
    x2 = x2.astype(head.w.dtype)   # pre-cast once: halves x DMA, no in-kernel cast

    tk, tn = head.tk, head.tn
    n_col_blocks = head.k_pad // tn
    grid = (n_col_blocks, head.chw_pad // tk)   # (parallel columns, reduction)

    cost = pl.CostEstimate(
        flops=2 * n_pad * head.chw_pad * head.k_pad,
        transcendentals=0,
        bytes_accessed=int(
            x2.size * x2.dtype.itemsize * n_col_blocks   # x refetched per column block
            + head.w.size * w_itemsize
            + head.b.size * 4
            + n_pad * head.k_pad * 4),
    )

    # VMEM footprint: double-buffered weight + x tiles, resident output, bias.
    tile_bytes = (2 * tk * tn * w_itemsize
                  + 2 * n_pad * tk * w_itemsize
                  + 2 * n_pad * tn * 4
                  + 2 * tn * 4)
    vmem_limit = int(min(56 * 1024 * 1024, max(32 * 1024 * 1024, 2 * tile_bytes)))

    out = pl.pallas_call(
        _folded_head_kernel,
        out_shape=jax.ShapeDtypeStruct((n_pad, head.k_pad), jnp.float32),
        grid_spec=pltpu.PrefetchScalarGridSpec(
            num_scalar_prefetch=0,
            grid=grid,
            in_specs=[
                pl.BlockSpec((n_pad, tk), lambda j, r: (0, r)),   # x
                pl.BlockSpec((tk, tn), lambda j, r: (r, j)),      # folded W
                pl.BlockSpec((1, tn), lambda j, r: (0, j)),       # folded b
            ],
            out_specs=pl.BlockSpec((n_pad, tn), lambda j, r: (0, j)),
        ),
        compiler_params=pltpu.CompilerParams(
            dimension_semantics=("parallel", "arbitrary"),
            vmem_limit_bytes=vmem_limit,
        ),
        cost_estimate=cost,
    )(x2, head.w, head.b)

    return out[:n, :head.k]


def _reference(x_nchw, w, b):
    mean = jnp.asarray(IMAGENET_MEAN, jnp.float32).reshape(1, 3, 1, 1)
    std = jnp.asarray(IMAGENET_STD, jnp.float32).reshape(1, 3, 1, 1)
    xn = (x_nchw - mean) / std
    return xn.reshape(x_nchw.shape[0], -1) @ w + b


if __name__ == "__main__":
    N, C, H, W = 2, 3, 16, 16
    K = 10  # num classes

    key = jax.random.PRNGKey(0)
    kx, kw, kb = jax.random.split(key, 3)

    x = jax.random.uniform(kx, (N, C, H, W), dtype=jnp.float32)   # image in [0,1]
    w = jax.random.normal(kw, (C * H * W, K), dtype=jnp.float32) * 0.02
    b = jax.random.normal(kb, (K,), dtype=jnp.float32) * 0.01

    ref = np.asarray(_reference(x, w, b))

    # f32-weight path: tight check of the folded-normalization + tiled GEMM.
    head_f32 = prepare_classifier_head(w, b, c=C, hw=H * W,
                                       weight_dtype=jnp.float32)
    logits_f32 = jax.block_until_ready(classifier_forward(x, head_f32))
    np.testing.assert_allclose(np.asarray(logits_f32), ref, rtol=1e-4, atol=1e-4)

    # bf16-weight path (the optimized default): looser tolerance for bf16.
    head_bf16 = prepare_classifier_head(w, b, c=C, hw=H * W,
                                        weight_dtype=jnp.bfloat16)
    logits = jax.block_until_ready(classifier_forward(x, head_bf16))
    np.testing.assert_allclose(np.asarray(logits), ref, rtol=2e-2, atol=2e-2)

    print("KERNEL_OK")
</pallas_src>

<mosaic_0001>
module attributes {stable_mosaic.version = 11 : i64} {
  func.func @_folded_head_kernel(%arg0: i32, %arg1: i32, %arg2: memref<8x768xf32, #tpu.memory_space<vmem>>, %arg3: memref<768x128xf32, #tpu.memory_space<vmem>>, %arg4: memref<1x128xf32, #tpu.memory_space<vmem>>, %arg5: memref<8x128xf32, #tpu.memory_space<vmem>>) attributes {dimension_semantics = [#tpu.dimension_semantics<parallel>, #tpu.dimension_semantics<arbitrary>], iteration_bounds = array<i64: 1, 1>, scalar_prefetch = 0 : i64, scratch_operands = 0 : i64, tpu.core_type = #tpu.core_type<tc>, window_params = [{transform_indices = @transform_0, window_bounds = array<i64: 8, 768>}, {transform_indices = @transform_1, window_bounds = array<i64: 768, 128>}, {transform_indices = @transform_2, window_bounds = array<i64: 1, 128>}, {transform_indices = @transform_3, window_bounds = array<i64: 8, 128>}]} {
    %c0_i32 = arith.constant 0 : i32
    %0 = arith.cmpi eq, %arg1, %c0_i32 : i32
    %1 = arith.extui %0 : i1 to i32
    %c0_i32_0 = arith.constant 0 : i32
    %2 = arith.cmpi ne, %1, %c0_i32_0 : i32
    scf.if %2 {
      %c0_8 = arith.constant 0 : index
      %c0_9 = arith.constant 0 : index
      %9 = vector.load %arg4[%c0_8, %c0_9] : memref<1x128xf32, #tpu.memory_space<vmem>>, vector<1x128xf32>
      %10 = vector.shape_cast %9 : vector<1x128xf32> to vector<1x128xf32>
      %11 = vector.broadcast %10 : vector<1x128xf32> to vector<8x128xf32>
      %c0_10 = arith.constant 0 : index
      %c0_11 = arith.constant 0 : index
      %12 = vector.load %arg5[%c0_10, %c0_11] : memref<8x128xf32, #tpu.memory_space<vmem>>, vector<8x128xf32>
      tpu.vector_store %arg5[%c0_10, %c0_11], %11 {strides = array<i32>} : memref<8x128xf32, #tpu.memory_space<vmem>>, vector<8x128xf32>,
    } else {
    }
    %c0 = arith.constant 0 : index
    %c0_1 = arith.constant 0 : index
    %3 = vector.load %arg5[%c0, %c0_1] : memref<8x128xf32, #tpu.memory_space<vmem>>, vector<8x128xf32>
    %c0_2 = arith.constant 0 : index
    %c0_3 = arith.constant 0 : index
    %4 = vector.load %arg2[%c0_2, %c0_3] : memref<8x768xf32, #tpu.memory_space<vmem>>, vector<8x768xf32>
    %c0_4 = arith.constant 0 : index
    %c0_5 = arith.constant 0 : index
    %5 = vector.load %arg3[%c0_4, %c0_5] : memref<768x128xf32, #tpu.memory_space<vmem>>, vector<768x128xf32>
    %cst = arith.constant dense<0.000000e+00> : vector<8x128xf32>
    %6 = tpu.matmul %4, %5, %cst {dimension_numbers = #tpu.dot_dimension_numbers<[1], [0], [0], [1], [0, 0, 1, 1], [], []>} : vector<8x768xf32>, vector<768x128xf32>, vector<8x128xf32> -> vector<8x128xf32>
    %7 = arith.addf %3, %6 : vector<8x128xf32>
    %c0_6 = arith.constant 0 : index
    %c0_7 = arith.constant 0 : index
    %8 = vector.load %arg5[%c0_6, %c0_7] : memref<8x128xf32, #tpu.memory_space<vmem>>, vector<8x128xf32>
    tpu.vector_store %arg5[%c0_6, %c0_7], %7 {strides = array<i32>} : memref<8x128xf32, #tpu.memory_space<vmem>>, vector<8x128xf32>,
    return
  }
  func.func @transform_0(%arg0: i32, %arg1: i32) -> (i32, i32) {
    %c0_i32 = arith.constant 0 : i32
    %c0_i32_0 = arith.constant 0 : i32
    return %c0_i32, %arg1 : i32, i32
  }
  func.func @transform_1(%arg0: i32, %arg1: i32) -> (i32, i32) {
    %c0_i32 = arith.constant 0 : i32
    return %arg1, %arg0 : i32, i32
  }
  func.func @transform_2(%arg0: i32, %arg1: i32) -> (i32, i32) {
    %c0_i32 = arith.constant 0 : i32
    %c0_i32_0 = arith.constant 0 : i32
    return %c0_i32, %arg0 : i32, i32
  }
  func.func @transform_3(%arg0: i32, %arg1: i32) -> (i32, i32) {
    %c0_i32 = arith.constant 0 : i32
    %c0_i32_0 = arith.constant 0 : i32
    return %c0_i32, %arg0 : i32, i32
  }
}

</mosaic_0001>

<bundles_post_ra>
// kernel: tpu_custom_call.1
= control target key start
LH: loop header
LB: loop body
LE: loop exit
PB: predicated region body
PF: predicated region fallthrough
CT: control target
= control target key end

     0   :  { %8 = vsyncpa [#allocation3], 0  ;;  %s418_s0 = inlined_call_operand.hbm [shape: f32[8,768], index: 0, kind: input, shape index: {}]   ;;  %s419_s1 = inlined_call_operand.hbm [shape: f32[768,128], index: 1, kind: input, shape index: {}]   ;;  %s420_s2 = inlined_call_operand.vmem [shape: f32[1,128], index: 2, kind: input, shape index: {}]   ;;  %s421_s3 = inlined_call_operand.hbm [shape: f32[8,128], index: 3, kind: output, shape index: {}]  }
   0x1   :  { %9 = vsyncpa [#allocation6], 0 }
   0x2   :  { %10 = vsyncpa [#allocation4], 0  ;;  %s16_s14 = sshll.u32 %s418_s0, 4  ;;  %s381_s15 = smov [#allocation2]   ;;  %s17_s14 = int_to_ptr.hbm [resolvable:$true] %s16_s14 }
   0x3   :  { %s18_s16 = sshll.u32 %s381_s15, 4  ;;  %s26_s19 = sshll.u32 %s419_s1, 4  ;;  %s19_s16 = int_to_ptr.vmem [resolvable:$true] %s18_s16  ;;  %s27_s19 = int_to_ptr.hbm [resolvable:$true] %s26_s19 }
   0x4   :  { %21 = dma.hbm_to_vmem [thread:$0]  %s17_s14, 768, %s19_s16, [#allocation3]  }
   0x5   :  { %s382_s20 = smov [#allocation5]   ;;  %s383_s22 = smov 128  }
   0x6   :  { %s28_s21 = sshll.u32 %s382_s20, 4  ;;  %s384_s23 = smov 8   ;;  %s29_s21 = int_to_ptr.vmem [resolvable:$true] %s28_s21 }
   0x7   :  { %34 = dma.hbm_to_vmem [thread:$0]  %s27_s19, 12288, %s29_s21, [#allocation6], %s383_s22, %s383_s22, %s384_s23  }
   0x8   :  { %375 = dma.done.wait [#allocation3], 768  }
   0x9   :  { %376 = vsyncadd [#allocation3], 4294966528 }
   0xa   :  { %377 = dma.done.wait [#allocation6], 12288  }
   0xb   :  { %378 = vsyncadd [#allocation6], 4294955008  ;;  %v76_v0 = vld [vmem:[#allocation5 + $0x78] sm:$0xff]  ;;  %v75_v1 = vld [vmem:[#allocation5 + $0x70] sm:$0xff]  ;;  %s385_s24 = smov [#allocation7]   ;;  %s286_s28 = sshll.u32 %s421_s3, 4  ;;  %s287_s28 = int_to_ptr.hbm [resolvable:$true] %s286_s28 }
   0xc   :  { %v92_v2 = vld [vmem:[#allocation5 + $0xf8] sm:$0xff]  ;;  %157 = vmatpush.msra.mxu0 %v76_v0  ;;  %v91_v3 = vld [vmem:[#allocation5 + $0xf0] sm:$0xff]  ;;  %v74_v4 = vld [vmem:[#allocation5 + $0x68] sm:$0xff]  ;;  %s284_s25 = sshll.u32 %s385_s24, 4  ;;  %s285_s25 = int_to_ptr.vmem [resolvable:$true] %s284_s25 }
   0xd   :  { %177 = vmatpush.msra.mxu1 %v92_v2  ;;  %v90_v5 = vld [vmem:[#allocation5 + $0xe8] sm:$0xff]  ;;  %v73_v6 = vld [vmem:[#allocation5 + $0x60] sm:$0xff]  ;;  %v72_v8 = vld [vmem:[#allocation5 + $0x58] sm:$0xff] }
   0xe   :  { %158 = vmatpush.msra.mxu0 %v75_v1  ;;  %v89_v7 = vld [vmem:[#allocation5 + $0xe0] sm:$0xff]  ;;  %v88_v9 = vld [vmem:[#allocation5 + $0xd8] sm:$0xff]  ;;  %v107_v11 = vld [vmem:[#allocation5 + $0x170] sm:$0xff] }
   0xf   :  { %178 = vmatpush.msra.mxu1 %v91_v3  ;;  %v108_v10 = vld [vmem:[#allocation5 + $0x178] sm:$0xff]  ;;  %v71_v13 = vld [vmem:[#allocation5 + $0x50] sm:$0xff]  ;;  %v106_v15 = vld [vmem:[#allocation5 + $0x168] sm:$0xff] }
  0x10   :  { %159 = vmatpush.msra.mxu0 %v74_v4  ;;  %v124_v12 = vld [vmem:[#allocation5 + $0x1f8] sm:$0xff]  ;;  %v87_v14 = vld [vmem:[#allocation5 + $0xd0] sm:$0xff]  ;;  %197 = vmatpush.msra.mxu2 %v108_v10  ;;  %v70_v17 = vld [vmem:[#allocation5 + $0x48] sm:$0xff] }
  0x11   :  { %179 = vmatpush.msra.mxu1 %v90_v5  ;;  %217 = vmatpush.msra.mxu3 %v124_v12  ;;  %v123_v16 = vld [vmem:[#allocation5 + $0x1f0] sm:$0xff]  ;;  %v86_v18 = vld [vmem:[#allocation5 + $0xc8] sm:$0xff]  ;;  %v105_v20 = vld [vmem:[#allocation5 + $0x160] sm:$0xff] }
  0x12   :  { %160 = vmatpush.msra.mxu0 %v73_v6  ;;  %198 = vmatpush.msra.mxu2 %v107_v11  ;;  %v122_v19 = vld [vmem:[#allocation5 + $0x1e8] sm:$0xff]  ;;  %v121_v21 = vld [vmem:[#allocation5 + $0x1e0] sm:$0xff]  ;;  %v104_v24 = vld [vmem:[#allocation5 + $0x158] sm:$0xff] }
  0x13   :  { %180 = vmatpush.msra.mxu1 %v89_v7  ;;  %218 = vmatpush.msra.mxu3 %v123_v16  ;;  %v69_v22 = vld [vmem:[#allocation5 + $0x40] sm:$0xff]  ;;  %v120_v25 = vld [vmem:[#allocation5 + $0x1d8] sm:$0xff]  ;;  %v103_v28 = vld [vmem:[#allocation5 + $0x150] sm:$0xff] }
  0x14   :  { %161 = vmatpush.msra.mxu0 %v72_v8  ;;  %v85_v23 = vld [vmem:[#allocation5 + $0xc0] sm:$0xff]  ;;  %199 = vmatpush.msra.mxu2 %v106_v15  ;;  %v68_v26 = vld [vmem:[#allocation5 + $0x38] sm:$0xff]  ;;  %v119_v29 = vld [vmem:[#allocation5 + $0x1d0] sm:$0xff] }
  0x15   :  { %181 = vmatpush.msra.mxu1 %v88_v9  ;;  %219 = vmatpush.msra.mxu3 %v122_v19  ;;  %v84_v27 = vld [vmem:[#allocation5 + $0xb8] sm:$0xff]  ;;  %v67_v30 = vld [vmem:[#allocation5 + $0x30] sm:$0xff]  ;;  %v102_v32 = vld [vmem:[#allocation5 + $0x148] sm:$0xff] }
  0x16   :  { %162 = vmatpush.msra.mxu0 %v71_v13  ;;  %200 = vmatpush.msra.mxu2 %v105_v20  ;;  %v83_v31 = vld [vmem:[#allocation5 + $0xb0] sm:$0xff]  ;;  %v118_v33 = vld [vmem:[#allocation5 + $0x1c8] sm:$0xff]  ;;  %v101_v36 = vld [vmem:[#allocation5 + $0x140] sm:$0xff] }
  0x17   :  { %182 = vmatpush.msra.mxu1 %v87_v14  ;;  %220 = vmatpush.msra.mxu3 %v121_v21  ;;  %v66_v34 = vld [vmem:[#allocation5 + $0x28] sm:$0xff]  ;;  %v117_v37 = vld [vmem:[#allocation5 + $0x1c0] sm:$0xff]  ;;  %v100_v40 = vld [vmem:[#allocation5 + $0x138] sm:$0xff] }
  0x18   :  { %163 = vmatpush.msra.mxu0 %v70_v17  ;;  %201 = vmatpush.msra.mxu2 %v104_v24  ;;  %v82_v35 = vld [vmem:[#allocation5 + $0xa8] sm:$0xff]  ;;  %v65_v38 = vld [vmem:[#allocation5 + $0x20] sm:$0xff]  ;;  %v116_v41 = vld [vmem:[#allocation5 + $0x1b8] sm:$0xff] }
  0x19   :  { %183 = vmatpush.msra.mxu1 %v86_v18  ;;  %221 = vmatpush.msra.mxu3 %v120_v25  ;;  %v81_v39 = vld [vmem:[#allocation5 + $0xa0] sm:$0xff]  ;;  %v64_v42 = vld [vmem:[#allocation5 + $0x18] sm:$0xff]  ;;  %v99_v44 = vld [vmem:[#allocation5 + $0x130] sm:$0xff] }
  0x1a   :  { %164 = vmatpush.msra.mxu0 %v69_v22  ;;  %202 = vmatpush.msra.mxu2 %v103_v28  ;;  %v80_v43 = vld [vmem:[#allocation5 + $0x98] sm:$0xff]  ;;  %v115_v45 = vld [vmem:[#allocation5 + $0x1b0] sm:$0xff]  ;;  %v98_v48 = vld [vmem:[#allocation5 + $0x128] sm:$0xff] }
  0x1b   :  { %184 = vmatpush.msra.mxu1 %v85_v23  ;;  %222 = vmatpush.msra.mxu3 %v119_v29  ;;  %v63_v46 = vld [vmem:[#allocation5 + $0x10] sm:$0xff]  ;;  %v114_v49 = vld [vmem:[#allocation5 + $0x1a8] sm:$0xff]  ;;  %v97_v52 = vld [vmem:[#allocation5 + $0x120] sm:$0xff] }
  0x1c   :  { %165 = vmatpush.msra.mxu0 %v68_v26  ;;  %203 = vmatpush.msra.mxu2 %v102_v32  ;;  %v79_v47 = vld [vmem:[#allocation5 + $0x90] sm:$0xff]  ;;  %v62_v50 = vld [vmem:[#allocation5 + $0x8] sm:$0xff]  ;;  %v113_v53 = vld [vmem:[#allocation5 + $0x1a0] sm:$0xff] }
  0x1d   :  { %185 = vmatpush.msra.mxu1 %v84_v27  ;;  %223 = vmatpush.msra.mxu3 %v118_v33  ;;  %v78_v51 = vld [vmem:[#allocation5 + $0x88] sm:$0xff]  ;;  %v61_v54 = vld [vmem:[#allocation5] sm:$0xff]  ;;  %v140_v56 = vld [vmem:[#allocation5 + $0x278] sm:$0xff] }
  0x1e   :  { %166 = vmatpush.msra.mxu0 %v67_v30  ;;  %204 = vmatpush.msra.mxu2 %v101_v36  ;;  %v77_v55 = vld [vmem:[#allocation5 + $0x80] sm:$0xff]  ;;  %v156_v57 = vld [vmem:[#allocation5 + $0x2f8] sm:$0xff]  ;;  %v139_v60 = vld [vmem:[#allocation5 + $0x270] sm:$0xff] }
  0x1f   :  { %186 = vmatpush.msra.mxu1 %v83_v31  ;;  %224 = vmatpush.msra.mxu3 %v117_v37  ;;  %v96_v58 = vld [vmem:[#allocation5 + $0x118] sm:$0xff]  ;;  %v155_v61 = vld [vmem:[#allocation5 + $0x2f0] sm:$0xff]  ;;  %v138_v0 = vld [vmem:[#allocation5 + $0x268] sm:$0xff] }
  0x20   :  { %167 = vmatpush.msra.mxu0 %v66_v34  ;;  %205 = vmatpush.msra.mxu2 %v100_v40  ;;  %v112_v59 = vld [vmem:[#allocation5 + $0x198] sm:$0xff]  ;;  %v95_v62 = vld [vmem:[#allocation5 + $0x110] sm:$0xff]  ;;  %v154_v1 = vld [vmem:[#allocation5 + $0x2e8] sm:$0xff] }
  0x21   :  { %187 = vmatpush.msra.mxu1 %v82_v35  ;;  %225 = vmatpush.msra.mxu3 %v116_v41  ;;  %v111_v63 = vld [vmem:[#allocation5 + $0x190] sm:$0xff]  ;;  %v94_v2 = vld [vmem:[#allocation5 + $0x108] sm:$0xff]  ;;  %v137_v4 = vld [vmem:[#allocation5 + $0x260] sm:$0xff] }
  0x22   :  { %168 = vmatpush.msra.mxu0 %v65_v38  ;;  %206 = vmatpush.msra.mxu2 %v99_v44  ;;  %v110_v3 = vld [vmem:[#allocation5 + $0x188] sm:$0xff]  ;;  %v153_v5 = vld [vmem:[#allocation5 + $0x2e0] sm:$0xff]  ;;  %v136_v8 = vld [vmem:[#allocation5 + $0x258] sm:$0xff] }
  0x23   :  { %188 = vmatpush.msra.mxu1 %v81_v39  ;;  %226 = vmatpush.msra.mxu3 %v115_v45  ;;  %v93_v6 = vld [vmem:[#allocation5 + $0x100] sm:$0xff]  ;;  %v152_v9 = vld [vmem:[#allocation5 + $0x2d8] sm:$0xff]  ;;  %v58_v11 = vld [vmem:[#allocation2 + $0x18] sm:$0xff] }
  0x24   :  { %169 = vmatpush.msra.mxu0 %v64_v42  ;;  %207 = vmatpush.msra.mxu2 %v98_v48  ;;  %v109_v7 = vld [vmem:[#allocation5 + $0x180] sm:$0xff]  ;;  %v135_v12 = vld [vmem:[#allocation5 + $0x250] sm:$0xff]  ;;  %v56_v15 = vld [vmem:[#allocation2 + $0x8] sm:$0xff] }
  0x25   :  { %189 = vmatpush.msra.mxu1 %v80_v43  ;;  %227 = vmatpush.msra.mxu3 %v114_v49  ;;  %v57_v10 = vld [vmem:[#allocation2 + $0x10] sm:$0xff]  ;;  %v151_v13 = vld [vmem:[#allocation5 + $0x2d0] sm:$0xff]  ;;  %v134_v16 = vld [vmem:[#allocation5 + $0x248] sm:$0xff] }
  0x26   :  { %170 = vmatpush.msra.mxu0 %v63_v46  ;;  %208 = vmatpush.msra.mxu2 %v97_v52  ;;  %v55_v14 = vld [vmem:[#allocation2] sm:$0xff]  ;;  %v150_v17 = vld [vmem:[#allocation5 + $0x2c8] sm:$0xff]  ;;  %v133_v18 = vld [vmem:[#allocation5 + $0x240] sm:$0xff] }
  0x27   :  { %190 = vmatpush.msra.mxu1 %v79_v47  ;;  %228 = vmatpush.msra.mxu3 %v113_v53  ;;  %v149_v19 = vld [vmem:[#allocation5 + $0x2c0] sm:$0xff]  ;;  %v132_v20 = vld [vmem:[#allocation5 + $0x238] sm:$0xff]  ;;  %v131_v22 = vld [vmem:[#allocation5 + $0x230] sm:$0xff] }
  0x28   :  { %171 = vmatpush.msra.mxu0 %v62_v50  ;;  %209 = vmatpush.msra.mxu2 %v96_v58  ;;  %v148_v21 = vld [vmem:[#allocation5 + $0x2b8] sm:$0xff]  ;;  %v147_v23 = vld [vmem:[#allocation5 + $0x2b0] sm:$0xff]  ;;  %v130_v24 = vld [vmem:[#allocation5 + $0x228] sm:$0xff] }
  0x29   :  { %191 = vmatpush.msra.mxu1 %v78_v51  ;;  %229 = vmatpush.msra.mxu3 %v112_v59  ;;  %v146_v25 = vld [vmem:[#allocation5 + $0x2a8] sm:$0xff]  ;;  %v129_v26 = vld [vmem:[#allocation5 + $0x220] sm:$0xff]  ;;  %v128_v28 = vld [vmem:[#allocation5 + $0x218] sm:$0xff] }
  0x2a   :  { %172 = vmatpush.msra.mxu0 %v61_v54  ;;  %210 = vmatpush.msra.mxu2 %v95_v62  ;;  %v145_v27 = vld [vmem:[#allocation5 + $0x2a0] sm:$0xff]  ;;  %v144_v29 = vld [vmem:[#allocation5 + $0x298] sm:$0xff]  ;;  %v127_v30 = vld [vmem:[#allocation5 + $0x210] sm:$0xff] }
  0x2b   :  { %192 = vmatpush.msra.mxu1 %v77_v55  ;;  %230 = vmatpush.msra.mxu3 %v111_v63  ;;  %v143_v31 = vld [vmem:[#allocation5 + $0x290] sm:$0xff]  ;;  %v126_v32 = vld [vmem:[#allocation5 + $0x208] sm:$0xff]  ;;  %v125_v34 = vld [vmem:[#allocation5 + $0x200] sm:$0xff] }
  0x2c   :  { %237 = vmatpush.msrb.mxu0 %v140_v56  ;;  %211 = vmatpush.msra.mxu2 %v94_v2  ;;  %v142_v33 = vld [vmem:[#allocation5 + $0x288] sm:$0xff]  ;;  %v141_v35 = vld [vmem:[#allocation5 + $0x280] sm:$0xff]  ;;  %v59_v36 = vld [vmem:[#allocation2 + $0x20] sm:$0xff] }
  0x2d   :  { %257 = vmatpush.msrb.mxu1 %v156_v57  ;;  %231 = vmatpush.msra.mxu3 %v110_v3  ;;  %v60_v37 = vld [vmem:[#allocation2 + $0x28] sm:$0xff]  ;;  %v302_v48 = vld [vmem:[%s420_s2] ss:$0 sm:$0xff] }
  0x2e   :  { %238 = vmatpush.msrb.mxu0 %v139_v60  ;;  %212 = vmatpush.msra.mxu2 %v93_v6 }
  0x2f   :  { %258 = vmatpush.msrb.mxu1 %v155_v61  ;;  %232 = vmatpush.msra.mxu3 %v109_v7 }
  0x30   :  { %239 = vmatpush.msrb.mxu0 %v138_v0  ;;  %213 = vmatmul.f32.vlgmr.msra.gmra.mxu2 %v57_v10 }
  0x31   :  { %259 = vmatpush.msrb.mxu1 %v154_v1  ;;  %233 = vmatmul.f32.vlgmr.msra.gmra.mxu3 %v58_v11 }
  0x32   :  { %240 = vmatpush.msrb.mxu0 %v137_v4  ;;  %193 = vmatmul.f32.vlgmr.msra.gmra.mxu1 %v56_v15 }
  0x33   :  { %260 = vmatpush.msrb.mxu1 %v153_v5  ;;  %173 = vmatmul.f32.vlgmr.msra.gmra.mxu0 %v55_v14 }
  0x34   :  { %241 = vmatpush.msrb.mxu0 %v136_v8 }
  0x35   :  { %261 = vmatpush.msrb.mxu1 %v152_v9 }
  0x36   :  { %242 = vmatpush.msrb.mxu0 %v135_v12 }
  0x37   :  { %262 = vmatpush.msrb.mxu1 %v151_v13 }
  0x38   :  { %243 = vmatpush.msrb.mxu0 %v134_v16 }
  0x39   :  { %263 = vmatpush.msrb.mxu1 %v150_v17 }
  0x3a   :  { %244 = vmatpush.msrb.mxu0 %v133_v18 }
  0x3b   :  { %264 = vmatpush.msrb.mxu1 %v149_v19 }
  0x3c   :  { %245 = vmatpush.msrb.mxu0 %v132_v20 }
  0x3d   :  { %265 = vmatpush.msrb.mxu1 %v148_v21 }
  0x3e   :  { %246 = vmatpush.msrb.mxu0 %v131_v22 }
  0x3f   :  { %266 = vmatpush.msrb.mxu1 %v147_v23 }
  0x40   :  { %247 = vmatpush.msrb.mxu0 %v130_v24 }
  0x41   :  { %267 = vmatpush.msrb.mxu1 %v146_v25 }
  0x42   :  { %248 = vmatpush.msrb.mxu0 %v129_v26 }
  0x43   :  { %268 = vmatpush.msrb.mxu1 %v145_v27 }
  0x44   :  { %249 = vmatpush.msrb.mxu0 %v128_v28 }
  0x45   :  { %269 = vmatpush.msrb.mxu1 %v144_v29 }
  0x46   :  { %250 = vmatpush.msrb.mxu0 %v127_v30 }
  0x47   :  { %270 = vmatpush.msrb.mxu1 %v143_v31 }
  0x48   :  { %251 = vmatpush.msrb.mxu0 %v126_v32 }
  0x49   :  { %271 = vmatpush.msrb.mxu1 %v142_v33 }
  0x4a   :  { %252 = vmatpush.msrb.mxu0 %v125_v34 }
  0x4b   :  { %272 = vmatpush.msrb.mxu1 %v141_v35  ;;  %253 = vmatmul.f32.vlgmr.msrb.gmra.mxu0 %v59_v36 }
  0x4c   :  { %273 = vmatmul.f32.vlgmr.msrb.gmra.mxu1 %v60_v37 }
  0xaf   :  { %v194_v39 = vpop.f32.mrf.mxu1 }
  0xb0   :  { %v174_v38 = vpop.f32.mrf.mxu0 }
  0xb1   :  { %v195_v40 = vadd.f32 %v194_v39, %v174_v38 }
  0xb3   :  { %v214_v41 = vpop.f32.mrf.mxu2 }
  0xb4   :  { %v215_v42 = vadd.f32 %v214_v41, %v195_v40  ;;  %v234_v43 = vpop.f32.mrf.mxu3 }
  0xb6   :  { %v235_v44 = vadd.f32 %v234_v43, %v215_v42 }
  0xc8   :  { %v254_v45 = vpop.f32.mrf.mxu0 }
  0xc9   :  { %v274_v46 = vpop.f32.mrf.mxu1  ;;  %v255_v47 = vadd.f32 %v254_v45, %v235_v44 }
  0xcb   :  { %v275_v49 = vadd.f32 %v274_v46, %v255_v47 }
  0xcd   :  { %v277_v50 = vadd.f32 %v302_v48, %v275_v49 }
  0xcf   :  { %278 = vst [vmem:[#allocation7] sm:$0xff] %v277_v50 }
  0xd0   :  { %289 = dma.vmem_to_hbm [thread:$0]  %s285_s25, 128, %s287_s28, [#allocation4]  }
  0xd1   :  { %379 = dma.done.wait [#allocation4], 128  }
  0xd2   :  { %380 = vsyncadd [#allocation4], 4294967168 }
  0xd3   :  { %294 = vsyncpa [#allocation3], 1 }
  0xd4   :  { %295 = vsyncpa [#allocation6], 1 }
  0xd5   :  { %296 = vsyncpa [#allocation4], 1 }

</bundles_post_ra>
